<compile_context>
chip_gen: v5e
topology: v5e:2x2
jax: 0.10.0
libtpu: 0.0.40
codegen_flags: <defaults>
</compile_context>

<pallas_src>
import functools

import jax
import jax.numpy as jnp
from jax.experimental import pallas as pl
from jax.experimental.pallas import tpu as pltpu


def _layer_norm(x, gamma, beta, eps):
    mu = jnp.mean(x, axis=-1, keepdims=True)
    xc = x - mu
    var = jnp.mean(xc * xc, axis=-1, keepdims=True)
    return xc * jax.lax.rsqrt(var + eps) * gamma + beta


def _encoder_layer_kernel(
    x_ref, npm_ref, mask_ref,
    wq_ref, bq_ref, wk_ref, bk_ref, wv_ref, bv_ref,
    fcw_ref, fcb_ref, ln1g_ref, ln1b_ref,
    w1_ref, b1_ref, w2_ref, b2_ref, ln2g_ref, ln2b_ref,
    out_ref, attn_ref,
    *, n_head, d_k, d_v, temperature, eps):
    # Per grid step (one batch element), kernel views:
    #   x_ref    (L, D)        npm_ref (L, 1)        mask_ref (L, L) int8
    #   out_ref  (L, D)        attn_ref (n_head, L, L)
    x = x_ref[...]
    x32 = x.astype(jnp.float32)
    npm = npm_ref[...].astype(jnp.float32)                     # (L, 1)

    inv_temp = jnp.float32(1.0 / temperature)
    # Additive mask bias, computed once (hoisted out of any per-head work).
    # Large finite negative instead of -inf: exp underflows to 0 and a fully
    # masked row degrades gracefully instead of producing NaN.
    mask_bias = mask_ref[...].astype(jnp.float32) * jnp.float32(-1e30)   # (L, L)

    # ---- QKV projections: three full-width MXU matmuls, f32 accumulation ----
    q = jnp.dot(x, wq_ref[...], preferred_element_type=jnp.float32) + bq_ref[...]
    k = jnp.dot(x, wk_ref[...], preferred_element_type=jnp.float32) + bk_ref[...]
    v = jnp.dot(x, wv_ref[...], preferred_element_type=jnp.float32) + bv_ref[...]
    q = q * inv_temp   # scale q once (cheaper than scaling (L, L) scores per head)

    # Head-major stacks: pure data movement (lane slices + leading-axis concat);
    # all matmuls below stay batched over heads.
    q_h = jnp.stack([q[:, h * d_k:(h + 1) * d_k] for h in range(n_head)], axis=0)
    k_h = jnp.stack([k[:, h * d_k:(h + 1) * d_k] for h in range(n_head)], axis=0)
    v_h = jnp.stack([v[:, h * d_v:(h + 1) * d_v] for h in range(n_head)], axis=0)

    # ---- Scaled dot-product attention, batched over heads ----
    scores = jnp.einsum("hqd,hkd->hqk", q_h, k_h,
                        preferred_element_type=jnp.float32)      # (H, L, L)
    scores = scores + mask_bias[None, :, :]

    m = jnp.max(scores, axis=-1, keepdims=True)
    e = jnp.exp(scores - m)
    denom = jnp.sum(e, axis=-1, keepdims=True)
    attn = e * pl.reciprocal(denom, approx=True)                 # EUP vrcp slot
    attn_ref[...] = attn.astype(attn_ref.dtype)

    ctx = jnp.einsum("hqk,hkd->hqd", attn, v_h,
                     preferred_element_type=jnp.float32)         # (H, L, d_v)

    # Head concat (stores only) + single fc matmul with K = n_head * d_v.
    ctx2 = jnp.concatenate([ctx[h] for h in range(n_head)], axis=-1)   # (L, H*d_v)
    proj = jnp.dot(ctx2, fcw_ref[...],
                   preferred_element_type=jnp.float32) + fcb_ref[...]

    # dropout == identity; residual + LayerNorm 1; non-pad masking.
    y = _layer_norm(proj + x32, ln1g_ref[...], ln1b_ref[...], eps) * npm

    # ---- Position-wise FFN (Conv1d kernel-size-1 == Linear) ----
    hdn = jnp.maximum(
        jnp.dot(y, w1_ref[...], preferred_element_type=jnp.float32) + b1_ref[...],
        0.0)
    f = jnp.dot(hdn, w2_ref[...], preferred_element_type=jnp.float32) + b2_ref[...]
    z = _layer_norm(f + y, ln2g_ref[...], ln2b_ref[...], eps) * npm

    out_ref[...] = z.astype(out_ref.dtype)


def encoder_layer_forward(enc_input, non_pad_mask, slf_attn_mask, params,
                          *, n_head, d_k, d_v, temperature, eps=1e-5):
    """enc_input (B,L,D), non_pad_mask (B,L,1), slf_attn_mask (B,L,L) bool/0-1."""
    B, L, D = enc_input.shape
    HK = n_head * d_k
    HV = n_head * d_v
    Dh = params["w1"].shape[1]

    npm = non_pad_mask.astype(enc_input.dtype)              # (B, L, 1)
    mask_i8 = slf_attn_mask.astype(jnp.int8)                 # (B, L, L), 4x less DMA than f32

    def row(v):
        return v.reshape(1, -1)

    kernel = functools.partial(
        _encoder_layer_kernel, n_head=n_head, d_k=d_k, d_v=d_v,
        temperature=float(temperature), eps=float(eps))

    # Per-batch operands (tiled over the grid) ...
    tiled_inputs = (enc_input, npm, mask_i8)
    # ... and layer parameters (full-extent blocks, constant index_map -> no
    # re-fetch between grid steps; stay VMEM-resident across the pipeline).
    weight_inputs = (
        params["wq"], row(params["bq"]),
        params["wk"], row(params["bk"]),
        params["wv"], row(params["bv"]),
        params["fc_w"], row(params["fc_b"]),
        row(params["ln1_g"]), row(params["ln1_b"]),
        params["w1"], row(params["b1"]),
        params["w2"], row(params["b2"]),
        row(params["ln2_g"]), row(params["ln2_b"]),
    )

    def full_spec(arr):
        nd = arr.ndim
        return pl.BlockSpec(arr.shape, lambda *_: (0,) * nd)

    in_specs = [
        pl.BlockSpec((None, L, D), lambda b: (b, 0, 0)),          # enc_input
        pl.BlockSpec((None, L, 1), lambda b: (b, 0, 0)),          # non_pad_mask
        pl.BlockSpec((None, L, L), lambda b: (b, 0, 0)),          # slf_attn_mask
    ] + [full_spec(w) for w in weight_inputs]

    out_specs = (
        pl.BlockSpec((None, L, D), lambda b: (b, 0, 0)),          # output (B,L,D)
        pl.BlockSpec((n_head, None, L, L), lambda b: (0, b, 0, 0)),  # attn (H,B,L,L)
    )

    out_shapes = (
        jax.ShapeDtypeStruct((B, L, D), enc_input.dtype),
        jax.ShapeDtypeStruct((n_head, B, L, L), enc_input.dtype),
    )

    # Advisory cost hint so XLA schedules neighbours around this call.
    def _nbytes(a):
        return int(a.size) * a.dtype.itemsize
    flops = (
        2 * B * L * D * (2 * HK + HV)              # q, k, v projections
        + 2 * B * n_head * L * L * (d_k + d_v)     # scores + context
        + 2 * B * L * HV * D                       # fc
        + 4 * B * L * D * Dh                       # FFN (two matmuls)
    )
    bytes_accessed = (sum(_nbytes(a) for a in tiled_inputs + weight_inputs)
                      + sum(int(jnp.prod(jnp.array(s.shape))) *
                            jnp.dtype(s.dtype).itemsize for s in out_shapes))
    cost = pl.CostEstimate(flops=int(flops),
                           transcendentals=int(B * n_head * L * L),
                           bytes_accessed=int(bytes_accessed))

    out, attn = pl.pallas_call(
        kernel,
        grid=(B,),
        in_specs=in_specs,
        out_specs=out_specs,
        out_shape=out_shapes,
        compiler_params=pltpu.CompilerParams(
            dimension_semantics=("parallel",)),    # shards across v7x's 2 TCs
        cost_estimate=cost,
    )(*tiled_inputs, *weight_inputs)

    # Metadata-only reshape back to the PyTorch attn layout (n_head*B, L, L).
    return out, attn.reshape(n_head * B, L, L)


def _reference(enc_input, non_pad_mask, slf_attn_mask, params,
               *, n_head, d_k, d_v, temperature, eps=1e-5):
    B, L, D = enc_input.shape

    def ln(x, g, b):
        mu = jnp.mean(x, axis=-1, keepdims=True)
        var = jnp.mean((x - mu) ** 2, axis=-1, keepdims=True)
        return (x - mu) / jnp.sqrt(var + eps) * g + b

    residual = enc_input
    q = enc_input @ params["wq"] + params["bq"]
    k = enc_input @ params["wk"] + params["bk"]
    v = enc_input @ params["wv"] + params["bv"]
    q = q.reshape(B, L, n_head, d_k).transpose(2, 0, 1, 3).reshape(n_head * B, L, d_k)
    k = k.reshape(B, L, n_head, d_k).transpose(2, 0, 1, 3).reshape(n_head * B, L, d_k)
    v = v.reshape(B, L, n_head, d_v).transpose(2, 0, 1, 3).reshape(n_head * B, L, d_v)
    mask = jnp.tile(slf_attn_mask, (n_head, 1, 1))
    attn = jnp.einsum("bqd,bkd->bqk", q, k) / temperature
    attn = jnp.where(mask, -jnp.inf, attn)
    attn = jax.nn.softmax(attn, axis=2)
    out = jnp.einsum("bqk,bkd->bqd", attn, v)
    out = out.reshape(n_head, B, L, d_v).transpose(1, 2, 0, 3).reshape(B, L, n_head * d_v)
    out = out @ params["fc_w"] + params["fc_b"]
    out = ln(out + residual, params["ln1_g"], params["ln1_b"])
    out = out * non_pad_mask

    res2 = out
    h = jnp.maximum(out @ params["w1"] + params["b1"], 0.0)
    f = h @ params["w2"] + params["b2"]
    f = ln(f + res2, params["ln2_g"], params["ln2_b"])
    f = f * non_pad_mask
    return f, attn


if __name__ == "__main__":
    key = jax.random.PRNGKey(0)
    B, L = 2, 8
    d_model, d_inner = 32, 64
    n_head, d_k, d_v = 2, 16, 16
    temperature = float(d_k) ** 0.5

    ks = jax.random.split(key, 16)
    enc_input = jax.random.normal(ks[0], (B, L, d_model), dtype=jnp.float32)

    # Padding-style masks: batch 0 full length, batch 1 has 2 padded positions.
    lengths = jnp.array([L, L - 2], dtype=jnp.int32)
    pad = jnp.arange(L)[None, :] >= lengths[:, None]                 # (B, L)
    non_pad_mask = (~pad).astype(jnp.float32)[:, :, None]            # (B, L, 1)
    slf_attn_mask = jnp.broadcast_to(pad[:, None, :], (B, L, L))     # key is pad

    def nrm(k, shape, scale=0.1):
        return scale * jax.random.normal(k, shape, dtype=jnp.float32)

    params = {
        "wq": nrm(ks[1], (d_model, n_head * d_k)),
        "bq": nrm(ks[2], (n_head * d_k,)),
        "wk": nrm(ks[3], (d_model, n_head * d_k)),
        "bk": nrm(ks[4], (n_head * d_k,)),
        "wv": nrm(ks[5], (d_model, n_head * d_v)),
        "bv": nrm(ks[6], (n_head * d_v,)),
        "fc_w": nrm(ks[7], (n_head * d_v, d_model)),
        "fc_b": nrm(ks[8], (d_model,)),
        "ln1_g": 1.0 + nrm(ks[9], (d_model,), 0.05),
        "ln1_b": nrm(ks[10], (d_model,), 0.05),
        "w1": nrm(ks[11], (d_model, d_inner)),
        "b1": nrm(ks[12], (d_inner,)),
        "w2": nrm(ks[13], (d_inner, d_model)),
        "b2": nrm(ks[14], (d_model,)),
        "ln2_g": 1.0 + nrm(ks[15], (d_model,), 0.05),
        "ln2_b": nrm(ks[15], (d_model,), 0.05) * 0.5,
    }

    out, attn = encoder_layer_forward(
        enc_input, non_pad_mask, slf_attn_mask, params,
        n_head=n_head, d_k=d_k, d_v=d_v, temperature=temperature)
    out = jax.block_until_ready(out)
    attn = jax.block_until_ready(attn)

    ref_out, ref_attn = _reference(
        enc_input, non_pad_mask, slf_attn_mask, params,
        n_head=n_head, d_k=d_k, d_v=d_v, temperature=temperature)

    # approx=True reciprocal in the softmax -> slightly relaxed tolerance.
    assert jnp.allclose(attn, ref_attn, atol=5e-3, rtol=5e-3), "attn mismatch"
    assert jnp.allclose(out, ref_out, atol=5e-3, rtol=5e-3), "output mismatch"

    print("KERNEL_OK")
</pallas_src>

<mosaic_0001>
module attributes {stable_mosaic.version = 11 : i64} {
  func.func @_encoder_layer_kernel(%arg0: i32, %arg1: memref<1x8x32xf32, #tpu.memory_space<vmem>>, %arg2: memref<1x8x1xf32, #tpu.memory_space<vmem>>, %arg3: memref<1x8x8xi8, #tpu.memory_space<vmem>>, %arg4: memref<32x32xf32, #tpu.memory_space<vmem>>, %arg5: memref<1x32xf32, #tpu.memory_space<vmem>>, %arg6: memref<32x32xf32, #tpu.memory_space<vmem>>, %arg7: memref<1x32xf32, #tpu.memory_space<vmem>>, %arg8: memref<32x32xf32, #tpu.memory_space<vmem>>, %arg9: memref<1x32xf32, #tpu.memory_space<vmem>>, %arg10: memref<32x32xf32, #tpu.memory_space<vmem>>, %arg11: memref<1x32xf32, #tpu.memory_space<vmem>>, %arg12: memref<1x32xf32, #tpu.memory_space<vmem>>, %arg13: memref<1x32xf32, #tpu.memory_space<vmem>>, %arg14: memref<32x64xf32, #tpu.memory_space<vmem>>, %arg15: memref<1x64xf32, #tpu.memory_space<vmem>>, %arg16: memref<64x32xf32, #tpu.memory_space<vmem>>, %arg17: memref<1x32xf32, #tpu.memory_space<vmem>>, %arg18: memref<1x32xf32, #tpu.memory_space<vmem>>, %arg19: memref<1x32xf32, #tpu.memory_space<vmem>>, %arg20: memref<1x8x32xf32, #tpu.memory_space<vmem>>, %arg21: memref<2x1x8x8xf32, #tpu.memory_space<vmem>>) attributes {dimension_semantics = [#tpu.dimension_semantics<parallel>], iteration_bounds = array<i64: 2>, scalar_prefetch = 0 : i64, scratch_operands = 0 : i64, tpu.core_type = #tpu.core_type<tc>, window_params = [{transform_indices = @transform_0, window_bounds = array<i64: 1, 8, 32>}, {transform_indices = @transform_1, window_bounds = array<i64: 1, 8, 1>}, {transform_indices = @transform_2, window_bounds = array<i64: 1, 8, 8>}, {pipeline_mode = #tpu.pipeline_mode<synchronous>, transform_indices = @transform_3, window_bounds = array<i64: 32, 32>}, {pipeline_mode = #tpu.pipeline_mode<synchronous>, transform_indices = @transform_4, window_bounds = array<i64: 1, 32>}, {pipeline_mode = #tpu.pipeline_mode<synchronous>, transform_indices = @transform_5, window_bounds = array<i64: 32, 32>}, {pipeline_mode = #tpu.pipeline_mode<synchronous>, transform_indices = @transform_6, window_bounds = array<i64: 1, 32>}, {pipeline_mode = #tpu.pipeline_mode<synchronous>, transform_indices = @transform_7, window_bounds = array<i64: 32, 32>}, {pipeline_mode = #tpu.pipeline_mode<synchronous>, transform_indices = @transform_8, window_bounds = array<i64: 1, 32>}, {pipeline_mode = #tpu.pipeline_mode<synchronous>, transform_indices = @transform_9, window_bounds = array<i64: 32, 32>}, {pipeline_mode = #tpu.pipeline_mode<synchronous>, transform_indices = @transform_10, window_bounds = array<i64: 1, 32>}, {pipeline_mode = #tpu.pipeline_mode<synchronous>, transform_indices = @transform_11, window_bounds = array<i64: 1, 32>}, {pipeline_mode = #tpu.pipeline_mode<synchronous>, transform_indices = @transform_12, window_bounds = array<i64: 1, 32>}, {pipeline_mode = #tpu.pipeline_mode<synchronous>, transform_indices = @transform_13, window_bounds = array<i64: 32, 64>}, {pipeline_mode = #tpu.pipeline_mode<synchronous>, transform_indices = @transform_14, window_bounds = array<i64: 1, 64>}, {pipeline_mode = #tpu.pipeline_mode<synchronous>, transform_indices = @transform_15, window_bounds = array<i64: 64, 32>}, {pipeline_mode = #tpu.pipeline_mode<synchronous>, transform_indices = @transform_16, window_bounds = array<i64: 1, 32>}, {pipeline_mode = #tpu.pipeline_mode<synchronous>, transform_indices = @transform_17, window_bounds = array<i64: 1, 32>}, {pipeline_mode = #tpu.pipeline_mode<synchronous>, transform_indices = @transform_18, window_bounds = array<i64: 1, 32>}, {transform_indices = @transform_19, window_bounds = array<i64: 1, 8, 32>}, {transform_indices = @transform_20, window_bounds = array<i64: 2, 1, 8, 8>}]} {
    %c0 = arith.constant 0 : index
    %c0_0 = arith.constant 0 : index
    %c0_1 = arith.constant 0 : index
    %0 = vector.load %arg1[%c0, %c0_0, %c0_1] : memref<1x8x32xf32, #tpu.memory_space<vmem>>, vector<1x8x32xf32>
    %1 = vector.shape_cast %0 : vector<1x8x32xf32> to vector<8x32xf32>
    %c0_2 = arith.constant 0 : index
    %c0_3 = arith.constant 0 : index
    %c0_4 = arith.constant 0 : index
    %2 = vector.load %arg2[%c0_2, %c0_3, %c0_4] : memref<1x8x1xf32, #tpu.memory_space<vmem>>, vector<1x8x1xf32>
    %3 = vector.shape_cast %2 : vector<1x8x1xf32> to vector<8x1xf32>
    %c0_5 = arith.constant 0 : index
    %c0_6 = arith.constant 0 : index
    %c0_7 = arith.constant 0 : index
    %4 = vector.load %arg3[%c0_5, %c0_6, %c0_7] : memref<1x8x8xi8, #tpu.memory_space<vmem>>, vector<1x8x8xi8>
    %5 = vector.shape_cast %4 : vector<1x8x8xi8> to vector<8x8xi8>
    %6 = arith.sitofp %5 : vector<8x8xi8> to vector<8x8xf32>
    %cst = arith.constant -1.000000e+30 : f32
    %7 = vector.broadcast %cst : f32 to vector<8x8xf32>
    %8 = arith.mulf %6, %7 : vector<8x8xf32>
    %c0_8 = arith.constant 0 : index
    %c0_9 = arith.constant 0 : index
    %9 = vector.load %arg4[%c0_8, %c0_9] : memref<32x32xf32, #tpu.memory_space<vmem>>, vector<32x32xf32>
    %cst_10 = arith.constant dense<0.000000e+00> : vector<8x32xf32>
    %10 = tpu.matmul %1, %9, %cst_10 {dimension_numbers = #tpu.dot_dimension_numbers<[1], [0], [0], [1], [0, 0, 1, 1], [], []>} : vector<8x32xf32>, vector<32x32xf32>, vector<8x32xf32> -> vector<8x32xf32>
    %c0_11 = arith.constant 0 : index
    %c0_12 = arith.constant 0 : index
    %11 = vector.load %arg5[%c0_11, %c0_12] : memref<1x32xf32, #tpu.memory_space<vmem>>, vector<1x32xf32>
    %12 = vector.broadcast %11 : vector<1x32xf32> to vector<8x32xf32>
    %13 = arith.addf %10, %12 : vector<8x32xf32>
    %c0_13 = arith.constant 0 : index
    %c0_14 = arith.constant 0 : index
    %14 = vector.load %arg6[%c0_13, %c0_14] : memref<32x32xf32, #tpu.memory_space<vmem>>, vector<32x32xf32>
    %cst_15 = arith.constant dense<0.000000e+00> : vector<8x32xf32>
    %15 = tpu.matmul %1, %14, %cst_15 {dimension_numbers = #tpu.dot_dimension_numbers<[1], [0], [0], [1], [0, 0, 1, 1], [], []>} : vector<8x32xf32>, vector<32x32xf32>, vector<8x32xf32> -> vector<8x32xf32>
    %c0_16 = arith.constant 0 : index
    %c0_17 = arith.constant 0 : index
    %16 = vector.load %arg7[%c0_16, %c0_17] : memref<1x32xf32, #tpu.memory_space<vmem>>, vector<1x32xf32>
    %17 = vector.broadcast %16 : vector<1x32xf32> to vector<8x32xf32>
    %18 = arith.addf %15, %17 : vector<8x32xf32>
    %c0_18 = arith.constant 0 : index
    %c0_19 = arith.constant 0 : index
    %19 = vector.load %arg8[%c0_18, %c0_19] : memref<32x32xf32, #tpu.memory_space<vmem>>, vector<32x32xf32>
    %cst_20 = arith.constant dense<0.000000e+00> : vector<8x32xf32>
    %20 = tpu.matmul %1, %19, %cst_20 {dimension_numbers = #tpu.dot_dimension_numbers<[1], [0], [0], [1], [0, 0, 1, 1], [], []>} : vector<8x32xf32>, vector<32x32xf32>, vector<8x32xf32> -> vector<8x32xf32>
    %c0_21 = arith.constant 0 : index
    %c0_22 = arith.constant 0 : index
    %21 = vector.load %arg9[%c0_21, %c0_22] : memref<1x32xf32, #tpu.memory_space<vmem>>, vector<1x32xf32>
    %22 = vector.broadcast %21 : vector<1x32xf32> to vector<8x32xf32>
    %23 = arith.addf %20, %22 : vector<8x32xf32>
    %cst_23 = arith.constant 2.500000e-01 : f32
    %24 = vector.broadcast %cst_23 : f32 to vector<8x32xf32>
    %25 = arith.mulf %13, %24 : vector<8x32xf32>
    %26 = vector.extract_strided_slice %25 {offsets = [0, 0], sizes = [8, 16], strides = [1, 1]} : vector<8x32xf32> to vector<8x16xf32>
    %27 = vector.extract_strided_slice %25 {offsets = [0, 16], sizes = [8, 16], strides = [1, 1]} : vector<8x32xf32> to vector<8x16xf32>
    %28 = vector.shape_cast %26 : vector<8x16xf32> to vector<1x8x16xf32>
    %29 = vector.shape_cast %27 : vector<8x16xf32> to vector<1x8x16xf32>
    %30 = tpu.concatenate %28, %29 in 0 : vector<1x8x16xf32>, vector<1x8x16xf32> -> vector<2x8x16xf32>
    %31 = vector.extract_strided_slice %18 {offsets = [0, 0], sizes = [8, 16], strides = [1, 1]} : vector<8x32xf32> to vector<8x16xf32>
    %32 = vector.extract_strided_slice %18 {offsets = [0, 16], sizes = [8, 16], strides = [1, 1]} : vector<8x32xf32> to vector<8x16xf32>
    %33 = vector.shape_cast %31 : vector<8x16xf32> to vector<1x8x16xf32>
    %34 = vector.shape_cast %32 : vector<8x16xf32> to vector<1x8x16xf32>
    %35 = tpu.concatenate %33, %34 in 0 : vector<1x8x16xf32>, vector<1x8x16xf32> -> vector<2x8x16xf32>
    %36 = vector.extract_strided_slice %23 {offsets = [0, 0], sizes = [8, 16], strides = [1, 1]} : vector<8x32xf32> to vector<8x16xf32>
    %37 = vector.extract_strided_slice %23 {offsets = [0, 16], sizes = [8, 16], strides = [1, 1]} : vector<8x32xf32> to vector<8x16xf32>
    %38 = vector.shape_cast %36 : vector<8x16xf32> to vector<1x8x16xf32>
    %39 = vector.shape_cast %37 : vector<8x16xf32> to vector<1x8x16xf32>
    %40 = tpu.concatenate %38, %39 in 0 : vector<1x8x16xf32>, vector<1x8x16xf32> -> vector<2x8x16xf32>
    "tpu.trace_start"() <{level = 10 : i32, message = "hqd,hkd->hqk"}> : () -> ()
    %cst_24 = arith.constant dense<0.000000e+00> : vector<2x8x8xf32>
    %41 = tpu.matmul %30, %35, %cst_24 {dimension_numbers = #tpu.dot_dimension_numbers<[2], [2], [1], [1], [0, 0, 0, 1, 1, 1], [0], [0]>} : vector<2x8x16xf32>, vector<2x8x16xf32>, vector<2x8x8xf32> -> vector<2x8x8xf32>
    "tpu.trace_stop"() : () -> ()
    %42 = vector.shape_cast %8 : vector<8x8xf32> to vector<1x8x8xf32>
    %43 = vector.broadcast %42 : vector<1x8x8xf32> to vector<2x8x8xf32>
    %44 = arith.addf %41, %43 : vector<2x8x8xf32>
    %cst_25 = arith.constant dense<0xFF800000> : vector<2x8xf32>
    %45 = vector.multi_reduction <maximumf>, %44, %cst_25 [2] : vector<2x8x8xf32> to vector<2x8xf32>
    %46 = vector.shape_cast %45 : vector<2x8xf32> to vector<2x8x1xf32>
    %47 = vector.broadcast %46 : vector<2x8x1xf32> to vector<2x8x8xf32>
    %48 = arith.subf %44, %47 : vector<2x8x8xf32>
    %49 = math.exp %48 : vector<2x8x8xf32>
    %cst_26 = arith.constant dense<0.000000e+00> : vector<2x8xf32>
    %50 = vector.multi_reduction <add>, %49, %cst_26 [2] : vector<2x8x8xf32> to vector<2x8xf32>
    %51 = vector.shape_cast %50 : vector<2x8xf32> to vector<2x8x1xf32>
    %52 = tpu.reciprocal %51 {approx = true} : vector<2x8x1xf32> -> vector<2x8x1xf32>
    %53 = vector.broadcast %52 : vector<2x8x1xf32> to vector<2x8x8xf32>
    %54 = arith.mulf %49, %53 : vector<2x8x8xf32>
    %c0_27 = arith.constant 0 : index
    %c0_28 = arith.constant 0 : index
    %c0_29 = arith.constant 0 : index
    %c0_30 = arith.constant 0 : index
    %55 = vector.load %arg21[%c0_27, %c0_28, %c0_29, %c0_30] : memref<2x1x8x8xf32, #tpu.memory_space<vmem>>, vector<2x1x8x8xf32>
    %56 = vector.shape_cast %55 : vector<2x1x8x8xf32> to vector<2x8x8xf32>
    %57 = vector.shape_cast %54 : vector<2x8x8xf32> to vector<2x1x8x8xf32>
    tpu.vector_store %arg21[%c0_27, %c0_28, %c0_29, %c0_30], %57 {strides = array<i32>} : memref<2x1x8x8xf32, #tpu.memory_space<vmem>>, vector<2x1x8x8xf32>,
    "tpu.trace_start"() <{level = 10 : i32, message = "hqk,hkd->hqd"}> : () -> ()
    %cst_31 = arith.constant dense<0.000000e+00> : vector<2x8x16xf32>
    %58 = tpu.matmul %54, %40, %cst_31 {dimension_numbers = #tpu.dot_dimension_numbers<[2], [1], [1], [2], [0, 0, 0, 1, 1, 2], [0], [0]>} : vector<2x8x8xf32>, vector<2x8x16xf32>, vector<2x8x16xf32> -> vector<2x8x16xf32>
    "tpu.trace_stop"() : () -> ()
    %59 = vector.extract_strided_slice %58 {offsets = [0, 0, 0], sizes = [1, 8, 16], strides = [1, 1, 1]} : vector<2x8x16xf32> to vector<1x8x16xf32>
    %60 = vector.shape_cast %59 : vector<1x8x16xf32> to vector<8x16xf32>
    %61 = vector.extract_strided_slice %58 {offsets = [1, 0, 0], sizes = [1, 8, 16], strides = [1, 1, 1]} : vector<2x8x16xf32> to vector<1x8x16xf32>
    %62 = vector.shape_cast %61 : vector<1x8x16xf32> to vector<8x16xf32>
    %63 = tpu.concatenate %60, %62 in 1 : vector<8x16xf32>, vector<8x16xf32> -> vector<8x32xf32>
    %c0_32 = arith.constant 0 : index
    %c0_33 = arith.constant 0 : index
    %64 = vector.load %arg10[%c0_32, %c0_33] : memref<32x32xf32, #tpu.memory_space<vmem>>, vector<32x32xf32>
    %cst_34 = arith.constant dense<0.000000e+00> : vector<8x32xf32>
    %65 = tpu.matmul %63, %64, %cst_34 {dimension_numbers = #tpu.dot_dimension_numbers<[1], [0], [0], [1], [0, 0, 1, 1], [], []>} : vector<8x32xf32>, vector<32x32xf32>, vector<8x32xf32> -> vector<8x32xf32>
    %c0_35 = arith.constant 0 : index
    %c0_36 = arith.constant 0 : index
    %66 = vector.load %arg11[%c0_35, %c0_36] : memref<1x32xf32, #tpu.memory_space<vmem>>, vector<1x32xf32>
    %67 = vector.broadcast %66 : vector<1x32xf32> to vector<8x32xf32>
    %68 = arith.addf %65, %67 : vector<8x32xf32>
    %69 = arith.addf %68, %1 : vector<8x32xf32>
    %c0_37 = arith.constant 0 : index
    %c0_38 = arith.constant 0 : index
    %70 = vector.load %arg12[%c0_37, %c0_38] : memref<1x32xf32, #tpu.memory_space<vmem>>, vector<1x32xf32>
    %c0_39 = arith.constant 0 : index
    %c0_40 = arith.constant 0 : index
    %71 = vector.load %arg13[%c0_39, %c0_40] : memref<1x32xf32, #tpu.memory_space<vmem>>, vector<1x32xf32>
    %cst_41 = arith.constant dense<0.000000e+00> : vector<8xf32>
    %72 = vector.multi_reduction <add>, %69, %cst_41 [1] : vector<8x32xf32> to vector<8xf32>
    %73 = vector.shape_cast %72 : vector<8xf32> to vector<8x1xf32>
    %cst_42 = arith.constant 3.200000e+01 : f32
    %74 = vector.broadcast %cst_42 : f32 to vector<8x1xf32>
    %75 = arith.divf %73, %74 : vector<8x1xf32>
    %76 = vector.broadcast %75 : vector<8x1xf32> to vector<8x32xf32>
    %77 = arith.subf %69, %76 : vector<8x32xf32>
    %78 = arith.mulf %77, %77 : vector<8x32xf32>
    %cst_43 = arith.constant dense<0.000000e+00> : vector<8xf32>
    %79 = vector.multi_reduction <add>, %78, %cst_43 [1] : vector<8x32xf32> to vector<8xf32>
    %80 = vector.shape_cast %79 : vector<8xf32> to vector<8x1xf32>
    %cst_44 = arith.constant 3.200000e+01 : f32
    %81 = vector.broadcast %cst_44 : f32 to vector<8x1xf32>
    %82 = arith.divf %80, %81 : vector<8x1xf32>
    %cst_45 = arith.constant 9.99999974E-6 : f32
    %83 = vector.broadcast %cst_45 : f32 to vector<8x1xf32>
    %84 = arith.addf %82, %83 : vector<8x1xf32>
    %85 = math.rsqrt %84 : vector<8x1xf32>
    %86 = vector.broadcast %85 : vector<8x1xf32> to vector<8x32xf32>
    %87 = arith.mulf %77, %86 : vector<8x32xf32>
    %88 = vector.broadcast %70 : vector<1x32xf32> to vector<8x32xf32>
    %89 = arith.mulf %87, %88 : vector<8x32xf32>
    %90 = vector.broadcast %71 : vector<1x32xf32> to vector<8x32xf32>
    %91 = arith.addf %89, %90 : vector<8x32xf32>
    %92 = vector.broadcast %3 : vector<8x1xf32> to vector<8x32xf32>
    %93 = arith.mulf %91, %92 : vector<8x32xf32>
    %c0_46 = arith.constant 0 : index
    %c0_47 = arith.constant 0 : index
    %94 = vector.load %arg14[%c0_46, %c0_47] : memref<32x64xf32, #tpu.memory_space<vmem>>, vector<32x64xf32>
    %cst_48 = arith.constant dense<0.000000e+00> : vector<8x64xf32>
    %95 = tpu.matmul %93, %94, %cst_48 {dimension_numbers = #tpu.dot_dimension_numbers<[1], [0], [0], [1], [0, 0, 1, 1], [], []>} : vector<8x32xf32>, vector<32x64xf32>, vector<8x64xf32> -> vector<8x64xf32>
    %c0_49 = arith.constant 0 : index
    %c0_50 = arith.constant 0 : index
    %96 = vector.load %arg15[%c0_49, %c0_50] : memref<1x64xf32, #tpu.memory_space<vmem>>, vector<1x64xf32>
    %97 = vector.broadcast %96 : vector<1x64xf32> to vector<8x64xf32>
    %98 = arith.addf %95, %97 : vector<8x64xf32>
    %cst_51 = arith.constant 0.000000e+00 : f32
    %99 = vector.broadcast %cst_51 : f32 to vector<8x64xf32>
    %100 = arith.maximumf %98, %99 : vector<8x64xf32>
    %c0_52 = arith.constant 0 : index
    %c0_53 = arith.constant 0 : index
    %101 = vector.load %arg16[%c0_52, %c0_53] : memref<64x32xf32, #tpu.memory_space<vmem>>, vector<64x32xf32>
    %cst_54 = arith.constant dense<0.000000e+00> : vector<8x32xf32>
    %102 = tpu.matmul %100, %101, %cst_54 {dimension_numbers = #tpu.dot_dimension_numbers<[1], [0], [0], [1], [0, 0, 1, 1], [], []>} : vector<8x64xf32>, vector<64x32xf32>, vector<8x32xf32> -> vector<8x32xf32>
    %c0_55 = arith.constant 0 : index
    %c0_56 = arith.constant 0 : index
    %103 = vector.load %arg17[%c0_55, %c0_56] : memref<1x32xf32, #tpu.memory_space<vmem>>, vector<1x32xf32>
    %104 = vector.broadcast %103 : vector<1x32xf32> to vector<8x32xf32>
    %105 = arith.addf %102, %104 : vector<8x32xf32>
    %106 = arith.addf %105, %93 : vector<8x32xf32>
    %c0_57 = arith.constant 0 : index
    %c0_58 = arith.constant 0 : index
    %107 = vector.load %arg18[%c0_57, %c0_58] : memref<1x32xf32, #tpu.memory_space<vmem>>, vector<1x32xf32>
    %c0_59 = arith.constant 0 : index
    %c0_60 = arith.constant 0 : index
    %108 = vector.load %arg19[%c0_59, %c0_60] : memref<1x32xf32, #tpu.memory_space<vmem>>, vector<1x32xf32>
    %cst_61 = arith.constant dense<0.000000e+00> : vector<8xf32>
    %109 = vector.multi_reduction <add>, %106, %cst_61 [1] : vector<8x32xf32> to vector<8xf32>
    %110 = vector.shape_cast %109 : vector<8xf32> to vector<8x1xf32>
    %cst_62 = arith.constant 3.200000e+01 : f32
    %111 = vector.broadcast %cst_62 : f32 to vector<8x1xf32>
    %112 = arith.divf %110, %111 : vector<8x1xf32>
    %113 = vector.broadcast %112 : vector<8x1xf32> to vector<8x32xf32>
    %114 = arith.subf %106, %113 : vector<8x32xf32>
    %115 = arith.mulf %114, %114 : vector<8x32xf32>
    %cst_63 = arith.constant dense<0.000000e+00> : vector<8xf32>
    %116 = vector.multi_reduction <add>, %115, %cst_63 [1] : vector<8x32xf32> to vector<8xf32>
    %117 = vector.shape_cast %116 : vector<8xf32> to vector<8x1xf32>
    %cst_64 = arith.constant 3.200000e+01 : f32
    %118 = vector.broadcast %cst_64 : f32 to vector<8x1xf32>
    %119 = arith.divf %117, %118 : vector<8x1xf32>
    %cst_65 = arith.constant 9.99999974E-6 : f32
    %120 = vector.broadcast %cst_65 : f32 to vector<8x1xf32>
    %121 = arith.addf %119, %120 : vector<8x1xf32>
    %122 = math.rsqrt %121 : vector<8x1xf32>
    %123 = vector.broadcast %122 : vector<8x1xf32> to vector<8x32xf32>
    %124 = arith.mulf %114, %123 : vector<8x32xf32>
    %125 = vector.broadcast %107 : vector<1x32xf32> to vector<8x32xf32>
    %126 = arith.mulf %124, %125 : vector<8x32xf32>
    %127 = vector.broadcast %108 : vector<1x32xf32> to vector<8x32xf32>
    %128 = arith.addf %126, %127 : vector<8x32xf32>
    %129 = vector.broadcast %3 : vector<8x1xf32> to vector<8x32xf32>
    %130 = arith.mulf %128, %129 : vector<8x32xf32>
    %c0_66 = arith.constant 0 : index
    %c0_67 = arith.constant 0 : index
    %c0_68 = arith.constant 0 : index
    %131 = vector.load %arg20[%c0_66, %c0_67, %c0_68] : memref<1x8x32xf32, #tpu.memory_space<vmem>>, vector<1x8x32xf32>
    %132 = vector.shape_cast %131 : vector<1x8x32xf32> to vector<8x32xf32>
    %133 = vector.shape_cast %130 : vector<8x32xf32> to vector<1x8x32xf32>
    tpu.vector_store %arg20[%c0_66, %c0_67, %c0_68], %133 {strides = array<i32>} : memref<1x8x32xf32, #tpu.memory_space<vmem>>, vector<1x8x32xf32>,
    return
  }
  func.func @transform_0(%arg0: i32) -> (i32, i32, i32) {
    %c0_i32 = arith.constant 0 : i32
    %c0_i32_0 = arith.constant 0 : i32
    %c0_i32_1 = arith.constant 0 : i32
    return %arg0, %c0_i32, %c0_i32_0 : i32, i32, i32
  }
  func.func @transform_1(%arg0: i32) -> (i32, i32, i32) {
    %c0_i32 = arith.constant 0 : i32
    %c0_i32_0 = arith.constant 0 : i32
    %c0_i32_1 = arith.constant 0 : i32
    return %arg0, %c0_i32, %c0_i32_0 : i32, i32, i32
  }
  func.func @transform_2(%arg0: i32) -> (i32, i32, i32) {
    %c0_i32 = arith.constant 0 : i32
    %c0_i32_0 = arith.constant 0 : i32
    %c0_i32_1 = arith.constant 0 : i32
    return %arg0, %c0_i32, %c0_i32_0 : i32, i32, i32
  }
  func.func @transform_3(%arg0: i32) -> (i32, i32) {
    %c0_i32 = arith.constant 0 : i32
    %c0_i32_0 = arith.constant 0 : i32
    %c0_i32_1 = arith.constant 0 : i32
    return %c0_i32, %c0_i32_0 : i32, i32
  }
  func.func @transform_4(%arg0: i32) -> (i32, i32) {
    %c0_i32 = arith.constant 0 : i32
    %c0_i32_0 = arith.constant 0 : i32
    %c0_i32_1 = arith.constant 0 : i32
    return %c0_i32, %c0_i32_0 : i32, i32
  }
  func.func @transform_5(%arg0: i32) -> (i32, i32) {
    %c0_i32 = arith.constant 0 : i32
    %c0_i32_0 = arith.constant 0 : i32
    %c0_i32_1 = arith.constant 0 : i32
    return %c0_i32, %c0_i32_0 : i32, i32
  }
  func.func @transform_6(%arg0: i32) -> (i32, i32) {
    %c0_i32 = arith.constant 0 : i32
    %c0_i32_0 = arith.constant 0 : i32
    %c0_i32_1 = arith.constant 0 : i32
    return %c0_i32, %c0_i32_0 : i32, i32
  }
  func.func @transform_7(%arg0: i32) -> (i32, i32) {
    %c0_i32 = arith.constant 0 : i32
    %c0_i32_0 = arith.constant 0 : i32
    %c0_i32_1 = arith.constant 0 : i32
    return %c0_i32, %c0_i32_0 : i32, i32
  }
  func.func @transform_8(%arg0: i32) -> (i32, i32) {
    %c0_i32 = arith.constant 0 : i32
    %c0_i32_0 = arith.constant 0 : i32
    %c0_i32_1 = arith.constant 0 : i32
    return %c0_i32, %c0_i32_0 : i32, i32
  }
  func.func @transform_9(%arg0: i32) -> (i32, i32) {
    %c0_i32 = arith.constant 0 : i32
    %c0_i32_0 = arith.constant 0 : i32
    %c0_i32_1 = arith.constant 0 : i32
    return %c0_i32, %c0_i32_0 : i32, i32
  }
  func.func @transform_10(%arg0: i32) -> (i32, i32) {
    %c0_i32 = arith.constant 0 : i32
    %c0_i32_0 = arith.constant 0 : i32
    %c0_i32_1 = arith.constant 0 : i32
    return %c0_i32, %c0_i32_0 : i32, i32
  }
  func.func @transform_11(%arg0: i32) -> (i32, i32) {
    %c0_i32 = arith.constant 0 : i32
    %c0_i32_0 = arith.constant 0 : i32
    %c0_i32_1 = arith.constant 0 : i32
    return %c0_i32, %c0_i32_0 : i32, i32
  }
  func.func @transform_12(%arg0: i32) -> (i32, i32) {
    %c0_i32 = arith.constant 0 : i32
    %c0_i32_0 = arith.constant 0 : i32
    %c0_i32_1 = arith.constant 0 : i32
    return %c0_i32, %c0_i32_0 : i32, i32
  }
  func.func @transform_13(%arg0: i32) -> (i32, i32) {
    %c0_i32 = arith.constant 0 : i32
    %c0_i32_0 = arith.constant 0 : i32
    %c0_i32_1 = arith.constant 0 : i32
    return %c0_i32, %c0_i32_0 : i32, i32
  }
  func.func @transform_14(%arg0: i32) -> (i32, i32) {
    %c0_i32 = arith.constant 0 : i32
    %c0_i32_0 = arith.constant 0 : i32
    %c0_i32_1 = arith.constant 0 : i32
    return %c0_i32, %c0_i32_0 : i32, i32
  }
  func.func @transform_15(%arg0: i32) -> (i32, i32) {
    %c0_i32 = arith.constant 0 : i32
    %c0_i32_0 = arith.constant 0 : i32
    %c0_i32_1 = arith.constant 0 : i32
    return %c0_i32, %c0_i32_0 : i32, i32
  }
  func.func @transform_16(%arg0: i32) -> (i32, i32) {
    %c0_i32 = arith.constant 0 : i32
    %c0_i32_0 = arith.constant 0 : i32
    %c0_i32_1 = arith.constant 0 : i32
    return %c0_i32, %c0_i32_0 : i32, i32
  }
  func.func @transform_17(%arg0: i32) -> (i32, i32) {
    %c0_i32 = arith.constant 0 : i32
    %c0_i32_0 = arith.constant 0 : i32
    %c0_i32_1 = arith.constant 0 : i32
    return %c0_i32, %c0_i32_0 : i32, i32
  }
  func.func @transform_18(%arg0: i32) -> (i32, i32) {
    %c0_i32 = arith.constant 0 : i32
    %c0_i32_0 = arith.constant 0 : i32
    %c0_i32_1 = arith.constant 0 : i32
    return %c0_i32, %c0_i32_0 : i32, i32
  }
  func.func @transform_19(%arg0: i32) -> (i32, i32, i32) {
    %c0_i32 = arith.constant 0 : i32
    %c0_i32_0 = arith.constant 0 : i32
    %c0_i32_1 = arith.constant 0 : i32
    return %arg0, %c0_i32, %c0_i32_0 : i32, i32, i32
  }
  func.func @transform_20(%arg0: i32) -> (i32, i32, i32, i32) {
    %c0_i32 = arith.constant 0 : i32
    %c0_i32_0 = arith.constant 0 : i32
    %c0_i32_1 = arith.constant 0 : i32
    %c0_i32_2 = arith.constant 0 : i32
    return %c0_i32, %arg0, %c0_i32_0, %c0_i32_1 : i32, i32, i32, i32
  }
}

</mosaic_0001>

<bundles_post_ra>
// kernel: tpu_custom_call.1
= control target key start
LH: loop header
LB: loop body
LE: loop exit
PB: predicated region body
PF: predicated region fallthrough
CT: control target
= control target key end

     0   :  { %s2784_s0 = inlined_call_operand.hbm [shape: f32[2,8,32], index: 0, kind: input, shape index: {}]   ;;  %s2785_s1 = inlined_call_operand.vmem [shape: f32[2,8,1], index: 1, kind: input, shape index: {}]   ;;  %s2786_s2 = inlined_call_operand.hbm [shape: s8[2,8,8], index: 2, kind: input, shape index: {}]   ;;  %s2787_s3 = inlined_call_operand.vmem [shape: f32[32,32], index: 3, kind: input, shape index: {}]   ;;  %s2788_s4 = inlined_call_operand.hbm [shape: f32[1,32], index: 4, kind: input, shape index: {}]   ;;  %s2789_s5 = inlined_call_operand.vmem [shape: f32[32,32], index: 5, kind: input, shape index: {}]   ;;  %s2790_s6 = inlined_call_operand.hbm [shape: f32[1,32], index: 6, kind: input, shape index: {}]   ;;  %s2791_s7 = inlined_call_operand.vmem [shape: f32[32,32], index: 7, kind: input, shape index: {}]   ;;  %s2792_s8 = inlined_call_operand.hbm [shape: f32[1,32], index: 8, kind: input, shape index: {}]   ;;  %s2793_s9 = inlined_call_operand.hbm [shape: f32[32,32], index: 9, kind: input, shape index: {}]   ;;  %s2794_s10 = inlined_call_operand.hbm [shape: f32[1,32], index: 10, kind: input, shape index: {}]   ;;  %s2795_s11 = inlined_call_operand.hbm [shape: f32[1,32], index: 11, kind: input, shape index: {}]   ;;  %s2796_s12 = inlined_call_operand.hbm [shape: f32[1,32], index: 12, kind: input, shape index: {}]   ;;  %s2797_s13 = inlined_call_operand.hbm [shape: f32[32,64], index: 13, kind: input, shape index: {}]   ;;  %s2798_s14 = inlined_call_operand.hbm [shape: f32[1,64], index: 14, kind: input, shape index: {}]   ;;  %s2799_s15 = inlined_call_operand.vmem [shape: f32[64,32], index: 15, kind: input, shape index: {}]   ;;  %s2800_s16 = inlined_call_operand.vmem [shape: f32[1,32], index: 16, kind: input, shape index: {}]   ;;  %s2801_s17 = inlined_call_operand.hbm [shape: f32[1,32], index: 17, kind: input, shape index: {}]   ;;  %s2802_s18 = inlined_call_operand.vmem [shape: f32[1,32], index: 18, kind: input, shape index: {}]   ;;  %s2803_s19 = inlined_call_operand.hbm [shape: f32[2,8,32], index: 19, kind: output, shape index: {0}]   ;;  %s2804_s20 = inlined_call_operand.hbm [shape: f32[2,2,8,8], index: 20, kind: output, shape index: {1}]  }
   0x1   :  { %2813 = sst [smem:[#allocation36_spill]] %s2784_s0 }
   0x2   :  { %2814 = sst [smem:[#allocation37_spill]] %s2785_s1 }
   0x3   :  { %2815 = sst [smem:[#allocation38_spill]] %s2786_s2 }
   0x4   :  { %2816 = sst [smem:[#allocation39_spill]] %s2787_s3 }
   0x5   :  { %2817 = sst [smem:[#allocation40_spill]] %s2788_s4 }
   0x6   :  { %2818 = sst [smem:[#allocation41_spill]] %s2790_s6 }
   0x7   :  { %2819 = sst [smem:[#allocation42_spill]] %s2791_s7 }
   0x8   :  { %2820 = sst [smem:[#allocation43_spill]] %s2792_s8 }
   0x9   :  { %2821 = sst [smem:[#allocation44_spill]] %s2793_s9 }
   0xa   :  { %2822 = sst [smem:[#allocation45_spill]] %s2794_s10 }
   0xb   :  { %2823 = sst [smem:[#allocation46_spill]] %s2795_s11 }
   0xc   :  { %2824 = sst [smem:[#allocation47_spill]] %s2796_s12 }
   0xd   :  { %2825 = sst [smem:[#allocation48_spill]] %s2797_s13 }
   0xe   :  { %2826 = sst [smem:[#allocation49_spill]] %s2798_s14 }
   0xf   :  { %2827 = sst [smem:[#allocation50_spill]] %s2799_s15 }
  0x10   :  { %2828 = sst [smem:[#allocation51_spill]] %s2800_s16 }
  0x11   :  { %2829 = sst [smem:[#allocation52_spill]] %s2801_s17 }
  0x12   :  { %2830 = sst [smem:[#allocation53_spill]] %s2802_s18 }
  0x13   :  { %2831 = sst [smem:[#allocation54_spill]] %s2803_s19 }
  0x14   :  { %2832 = sst [smem:[#allocation55_spill]] %s2804_s20 }
  0x15   :  { %26 = vsyncpa [#allocation3], 0 }
  0x16   :  { %28 = vsyncpa [#allocation3 + $0x1], 0 }
  0x17   :  { %29 = vsyncpa [#allocation6], 0 }
  0x18   :  { %31 = vsyncpa [#allocation6 + $0x1], 0 }
  0x19   :  { %32 = vsyncpa [#allocation9], 0 }
  0x1a   :  { %33 = vsyncpa [#allocation12], 0 }
  0x1b   :  { %34 = vsyncpa [#allocation15], 0 }
  0x1c   :  { %35 = vsyncpa [#allocation18], 0 }
  0x1d   :  { %36 = vsyncpa [#allocation21], 0 }
  0x1e   :  { %37 = vsyncpa [#allocation4], 0 }
  0x1f   :  { %39 = vsyncpa [#allocation4 + $0x1], 0 }
  0x20   :  { %40 = vsyncpa [#allocation24], 0 }
  0x21   :  { %42 = vsyncpa [#allocation24 + $0x1], 0  ;;  %s2397_s1 = smov 0   ;;  %s2399_s22 = smov 0  }
  0x22   :  { %s2401_s23 = smov 0   ;;  %s2403_s24 = smov 0  }
  0x23 LB: > { %s2833_s3 = sld [smem:[#allocation40_spill]]  ;;  %s2421_s27 = sadd.s32 4294967295, %s2271_s24   ;;  %s2271_s24 = sphi %s2403_s24, %s2867_s24   ;;  %s2267_s23 = sphi %s2401_s23, %s2866_s23   ;;  %s2263_s22 = sphi %s2399_s22, %s2865_s22   ;;  %s2259_s1 = sphi %s2397_s1, %s2864_s1  }
  0x24   : > { %p1544_p0 = scmp.ge.s32.totalorder %s2271_s24, 1  ;;  %p69_p1 = scmp.eq.s32.totalorder %s2421_s27, 0 }
  0x25   : > { %p519_p2 = scmp.lt.s32.totalorder %s2271_s24, 3  ;;  %s2273_s4 = smov [#allocation7]  }
  0x26   : > { %s536_s29 = sshll.u32 %s2273_s4, 4  ;;  %s2835_s6 = sld [smem:[#allocation41_spill]]  ;;  %s537_s29 = int_to_ptr.vmem [resolvable:$true] %s536_s29 }
  0x27   : > { %p2426_p3 = pnand %p1544_p0, %p519_p2  ;;  %s2274_s25 = smov [#allocation8]  }
  0x28   : > { %s2837_s9 = sld [smem:[#allocation44_spill]]  ;;  %s2275_s30 = smov [#allocation11]  }
  0x29   : > { %s534_s26 = sshll.u32 %s2833_s3, 4  ;;  %p1642_p5 = pneg %p2426_p3  ;;  %s535_s26 = int_to_ptr.hbm [resolvable:$true] %s534_s26 }
  0x2a   : > { %s551_s3 = sshll.u32 %s2274_s25, 4  ;;  %s577_s0 = sshll.u32 %s2275_s30, 4  ;;  %s552_s3 = int_to_ptr.vmem [resolvable:$true] %s551_s3  ;;  %s578_s0 = int_to_ptr.vmem [resolvable:$true] %s577_s0 }
  0x2b   : > { %p2438_p6 = pnand %p1642_p5, %p69_p1  ;;  %s2838_s11 = sld [smem:[#allocation46_spill]] }
  0x2c   : > { %s549_s21 = sshll.u32 %s2835_s6, 4  ;;  %s2276_s25 = smov 128   ;;  %s550_s21 = int_to_ptr.hbm [resolvable:$true] %s549_s21 }
  0x2d   : > { %1645 = dma.hbm_to_vmem [thread:$0]  (!%p2438_p6), %s535_s26, 16, %s537_s29, [#allocation6]  }
  0x2e   : > { %s575_s18 = sshll.u32 %s2837_s9, 4  ;;  %s2277_s15 = smov 8   ;;  %s576_s18 = int_to_ptr.hbm [resolvable:$true] %s575_s18 }
  0x2f   : > { %1648 = dma.hbm_to_vmem [thread:$0]  (!%p2438_p6), %s550_s21, 16, %s552_s3, [#allocation9]  }
  0x30   : > { %1654 = dma.hbm_to_vmem [thread:$0]  (!%p2438_p6), %s576_s18, 512, %s578_s0, [#allocation12], %s2276_s25, %s2276_s25, %s2277_s15  }
  0x31   : > { %s602_s16 = sshll.u32 %s2838_s11, 4  ;;  %s2278_s19 = smov [#allocation14]   ;;  %s603_s16 = int_to_ptr.hbm [resolvable:$true] %s602_s16 }
  0x32   : > { %s604_s4 = sshll.u32 %s2278_s19, 4  ;;  %s2839_s13 = sld [smem:[#allocation48_spill]]  ;;  %s605_s4 = int_to_ptr.vmem [resolvable:$true] %s604_s4 }
  0x33   : > { %1660 = dma.hbm_to_vmem [thread:$0]  (!%p2438_p6), %s603_s16, 16, %s605_s4, [#allocation15]  }
  0x34   : > { %s2840_s8 = sld [smem:[#allocation43_spill]]  ;;  %s2279_s21 = smov [#allocation17]  }
  0x35   : > { %s627_s3 = sshll.u32 %s2279_s21, 4  ;;  %s2280_s18 = smov [#allocation10]   ;;  %s628_s3 = int_to_ptr.vmem [resolvable:$true] %s627_s3 }
  0x36   : > { %s566_s30 = sshll.u32 %s2280_s18, 4  ;;  %s2841_s10 = sld [smem:[#allocation45_spill]]  ;;  %s567_s30 = int_to_ptr.vmem [resolvable:$true] %s566_s30 }
  0x37   : > { %s2842_s12 = sld [smem:[#allocation47_spill]]  ;;  %s2281_s29 = smov [#allocation13]  }
  0x38   : > { %s625_s26 = sshll.u32 %s2839_s13, 4  ;;  %s592_s6 = sshll.u32 %s2281_s29, 4  ;;  %s626_s26 = int_to_ptr.hbm [resolvable:$true] %s625_s26  ;;  %s593_s6 = int_to_ptr.vmem [resolvable:$true] %s592_s6 }
  0x39   : > { %1666 = dma.hbm_to_vmem [thread:$0]  (!%p2438_p6), %s626_s26, 512, %s628_s3, [#allocation18], %s2276_s25, %s2276_s25, %s2277_s15  }
  0x3a   : > { %s564_s20 = sshll.u32 %s2840_s8, 4  ;;  %s2282_s15 = smov [#allocation16]   ;;  %s565_s20 = int_to_ptr.hbm [resolvable:$true] %s564_s20 }
  0x3b   : > { %1651 = dma.hbm_to_vmem [thread:$0]  (!%p2438_p6), %s565_s20, 16, %s567_s30, [#allocation9]  }
  0x3c   : > { %s590_s0 = sshll.u32 %s2841_s10, 4  ;;  %s616_s25 = sshll.u32 %s2282_s15, 4  ;;  %s591_s0 = int_to_ptr.hbm [resolvable:$true] %s590_s0  ;;  %s617_s25 = int_to_ptr.vmem [resolvable:$true] %s616_s25 }
  0x3d   : > { %s614_s4 = sshll.u32 %s2842_s12, 4  ;;  %s2843_s14 = sld [smem:[#allocation49_spill]]  ;;  %s615_s4 = int_to_ptr.hbm [resolvable:$true] %s614_s4 }
  0x3e   : > { %1657 = dma.hbm_to_vmem [thread:$0]  (!%p2438_p6), %s591_s0, 16, %s593_s6, [#allocation12]  }
  0x3f   : > { %1663 = dma.hbm_to_vmem [thread:$0]  (!%p2438_p6), %s615_s4, 16, %s617_s25, [#allocation15]  }
  0x40   : > { %s2844_s17 = sld [smem:[#allocation52_spill]]  ;;  %s2283_s7 = smov [#allocation19]  }
  0x41   : > { %s642_s9 = sshll.u32 %s2283_s7, 4  ;;  %s2284_s0 = smov [#allocation20]   ;;  %s643_s9 = int_to_ptr.vmem [resolvable:$true] %s642_s9 }
  0x42   : > { %s660_s16 = sshll.u32 %s2284_s0, 4  ;;  %s1543_s19 = sadd.s32 4294967294, %s2271_s24   ;;  %s661_s16 = int_to_ptr.vmem [resolvable:$true] %s660_s16 }
  0x43   : > { %s640_s20 = sshll.u32 %s2843_s14, 4  ;;  %s2488_s4 = sadd.s32 1, %s2271_s24   ;;  %s641_s20 = int_to_ptr.hbm [resolvable:$true] %s640_s20 }
  0x44   : > { %1669 = dma.hbm_to_vmem [thread:$0]  (!%p2438_p6), %s641_s20, 16, %s643_s9, [#allocation18]  }
  0x45   : > { %s52_s29 = ssub.s32 %s2271_s24, %s2488_s4  ;;  %s55_s6 = sadd.s32 1, %s2267_s23 }
  0x46   : > { %s658_s30 = sshll.u32 %s2844_s17, 4  ;;  %p53_p7 = scmp.eq.s32.totalorder %s52_s29, 0  ;;  %s659_s30 = int_to_ptr.hbm [resolvable:$true] %s658_s30 }
  0x47   : > { %1672 = dma.hbm_to_vmem [thread:$0]  (!%p2438_p6), %s659_s30, 16, %s661_s16, [#allocation21]  }
  0x48   : > { %p62_p8 = scmp.ne.s32.totalorder %s2267_s23, %s2263_s22  ;;  %p63_p9 = scmp.eq.s32.totalorder %s2271_s24, 0 }
  0x49   : > { %p68_p10 = scmp.ne.s32.totalorder %s2263_s22, %s2259_s1  ;;  %p480_p13 = scmp.eq.s32.totalorder %s2421_s27, 1 }
  0x4a   : > { %s2499_s15 = scalar_select %p53_p7, %s2267_s23, %s55_s6  }
  0x4b   : > { %p2501_p11 = por %p63_p9, %p62_p8  ;;  %p2507_p12 = por %p69_p1, %p68_p10 }
  0x4c   : > { %2845 = sst [smem:[#allocation35_spill]] %s2499_s15  ;;  %p486_p0 = scmp.eq.s32.totalorder %s1543_s19, 1 }
  0x4d   : > { %p1697_p2 = scmp.lt.s32.totalorder %s2271_s24, 2  ;;  %s2514_s26 = sand.u32 1, %s2267_s23  }
  0x4e   : > { %p2516_p5 = por %p480_p13, %p62_p8  ;;  %p2520_p6 = por %p486_p0, %p68_p10 }
  0x4f   : > { %s1556_s3 = sshll.u32 %s2514_s26, 3  ;;  %s1557_s18 = sshll.u32 %s2271_s24, 3 }
  0x50   : > { %s2850_s9 = sld [smem:[#allocation36_spill]]  ;;  %s678_s16 = scalar_lea.vmem [#allocation2], %s1556_s3 }
  0x51   : > { %s686_s19 = sshll.u32 %s678_s16, 4  ;;  %p2531_p7 = pnand %p1697_p2, %p2501_p11  ;;  %s687_s19 = int_to_ptr.vmem [resolvable:$true] %s686_s19 }
  0x52   : > { %s700_s8 = sand.u32 1, %s2271_s24   ;;  %s1558_s10 = sshll.u32 %s2514_s26, 1 }
  0x53   : > { %s675_s11 = scalar_lea.sflag [#allocation3], %s2514_s26  ;;  %p2089_p9 = pneg %p2531_p7 }
  0x56   : > { %s682_s0 = scalar_lea.hbm %s2850_s9, %s1557_s18  ;;  %s2092_s18 = scalar_lea.hbm %s2850_s9, 16 }
  0x57   : > { %s684_s29 = sshll.u32 %s682_s0, 4  ;;  %s685_s29 = int_to_ptr.hbm [resolvable:$true] %s684_s29 }
  0x58   : > { %s2085_s12 = sshra.s32 %s685_s29, 4  ;;  %s2086_s12 = int_to_ptr.hbm [resolvable:$true] %s2085_s12 }
  0x59   : > { %s2087_s13 = scalar_lea.hbm %s2086_s12, 8  ;;  %p2093_p11 = scmp.lt.s32.totalorder %s2086_s12, %s2850_s9 }
  0x5a   : > { %p2088_p8 = scmp.ne.s32.totalorder %s2086_s12, %s2087_s13  ;;  %p2094_p0 = scmp.lt.s32.totalorder %s2092_s18, %s2087_s13 }
  0x5c   : > { %p2090_p10 = pnand %p2089_p9, %p2088_p8  ;;  %p2095_p2 = por %p2094_p0, %p2093_p11 }
  0x5e   : > { %p2091_p13 = pneg %p2090_p10 }
  0x60   : > { %p2096_p4 = pnand %p2095_p2, %p2091_p13 }
  0x62   : > { %2099 = shalt.err (!%p2096_p4)
}
  0x63   : > { %1676 = dma.hbm_to_vmem [thread:$0]  (!%p2531_p7), %s685_s29, 128, %s687_s19, %s675_s11  }
  0x64   : > { %s1559_s26 = sshll.u32 %s2271_s24, 1  ;;  %s2852_s14 = sld [smem:[#allocation38_spill]] }
  0x65   : > { %s704_s25 = scalar_lea.vmem [#allocation5], %s1558_s10  ;;  %s701_s12 = scalar_lea.sflag [#allocation6], %s700_s8 }
  0x66   : > { %s712_s3 = sshll.u32 %s704_s25, 4  ;;  %s713_s3 = int_to_ptr.vmem [resolvable:$true] %s712_s3 }
  0x6a   : > { %s708_s17 = scalar_lea.hbm %s2852_s14, %s1559_s26  ;;  %s2122_s29 = scalar_lea.hbm %s2852_s14, 4 }
  0x6b   : > { %s710_s15 = sshll.u32 %s708_s17, 4  ;;  %s711_s15 = int_to_ptr.hbm [resolvable:$true] %s710_s15 }
  0x6c   : > { %s2115_s13 = sshra.s32 %s711_s15, 4  ;;  %s2116_s13 = int_to_ptr.hbm [resolvable:$true] %s2115_s13 }
  0x6d   : > { %s2117_s18 = scalar_lea.hbm %s2116_s13, 2  ;;  %p2123_p13 = scmp.lt.s32.totalorder %s2116_s13, %s2852_s14 }
  0x6e   : > { %p2118_p4 = scmp.ne.s32.totalorder %s2116_s13, %s2117_s18  ;;  %p2124_p11 = scmp.lt.s32.totalorder %s2122_s29, %s2117_s18 }
  0x70   : > { %p2120_p8 = pnand %p2118_p4, %p2089_p9  ;;  %p2125_p0 = por %p2124_p11, %p2123_p13 }
  0x72   : > { %p2121_p10 = pneg %p2120_p8 }
  0x74   : > { %p2126_p2 = pnand %p2125_p0, %p2121_p10 }
  0x76   : > { %2129 = shalt.err (!%p2126_p2)
}
  0x77   : > { %1679 = dma.hbm_to_vmem [thread:$0]  (!%p2531_p7), %s711_s15, 32, %s713_s3, %s701_s12  }
  0x78   : > { %721 = sbr.rel (%p2426_p3) target bundleno = 1989 (0x7c5), region = 96  ;;  %s2569_s8 = sand.u32 (!%p2426_p3), 1, %s2263_s22  }
  0x79   : > { %s2812_s10 = sshll.u32 (!%p2426_p3), %s2569_s8, 3  ;;  %s724_s17 = scalar_lea.sflag (!%p2426_p3), [#allocation3], %s2569_s8 }
  0x7a   : > { %s727_s26 = scalar_lea.vmem (!%p2426_p3), [#allocation2], %s2812_s10 }
  0x7d   : > { %2218 = dma.done.wait (%p2507_p12), %s724_s17, 128  }
  0x7e   : > { %2220 = vsyncadd (%p2507_p12), %s724_s17, 4294967168  ;;  %s733_s28 = sand.u32 1, %s2421_s27   ;;  %s1562_s15 = sshll.u32 %s2569_s8, 1 }
  0x7f   : > { %s734_s6 = scalar_lea.sflag [#allocation6], %s733_s28  ;;  %s2581_s0 = scalar_lea.vmem [#allocation5], %s1562_s15 }
  0x80   : > { %2222 = dma.done.wait (%p2507_p12), %s734_s6, 32  }
  0x81   : > { %2224 = vsyncadd (%p2507_p12), %s734_s6, 4294967264 }
  0x82   : > { %2226 = dma.done.wait (%p69_p1), [#allocation6], 16  }
  0x83   : > { %2228 = vsyncadd (%p69_p1), [#allocation6], 4294967280 }
  0x84   : > { %2230 = dma.done.wait (%p69_p1), [#allocation9], 32  }
  0x85   : > { %2232 = vsyncadd (%p69_p1), [#allocation9], 4294967264 }
  0x86   : > { %2234 = dma.done.wait (%p69_p1), [#allocation12], 528  }
  0x87   : > { %2236 = vsyncadd (%p69_p1), [#allocation12], 4294966768 }
  0x88   : > { %2238 = dma.done.wait (%p69_p1), [#allocation15], 32  }
  0x89   : > { %2240 = vsyncadd (%p69_p1), [#allocation15], 4294967264 }
  0x8a   : > { %2242 = dma.done.wait (%p69_p1), [#allocation18], 528  }
  0x8b   : > { %2244 = vsyncadd (%p69_p1), [#allocation18], 4294966768 }
  0x8c   : > { %2246 = dma.done.wait (%p69_p1), [#allocation21], 16  }
  0x8d   : > { %2248 = vsyncadd (%p69_p1), [#allocation21], 4294967280  ;;  %s2853_s25 = sld [smem:[#allocation39_spill]]  ;;  %v2623_v4 = vld [vmem:[%s727_s26] sm:$0xff]  ;;  %vm877_vm0 = vcmask 261120   ;;  %v904_v5 = vld [vmem:[%s2789_s5 + $0x18] sm:$0xff] }
  0x8e   : > { %v903_v6 = vld [vmem:[%s2789_s5 + $0x10] sm:$0xff]  ;;  %v902_v7 = vld [vmem:[%s2789_s5 + $0x8] sm:$0xff]  ;;  %v901_v8 = vld [vmem:[%s2789_s5] sm:$0xff]  ;;  %vm968_vm1 = vcmask 130048   ;;  %s2285_s2 = smov 112   ;;  %s2854_s12 = sld [smem:[#allocation42_spill]] }
  0x8f   : > { %v1761_v10 = vld [vmem:[#allocation7] ss:$0 sm:$0xff]  ;;  %v1762_v11 = vld [vmem:[#allocation8] ss:$0 sm:$0xff]  ;;  %v865_v22 = vld [vmem:[%s2581_s0] sm:$0x3] }
  0x90   : > { %v866_v23 = vunpack.c.0.s8 %v865_v22  ;;  %vm1017_vm2 = vcmask 64512   ;;  %v1763_v32 = vld [vmem:[#allocation10] ss:$0 sm:$0xff]  ;;  %s1574_s0 = sshll.u32 %s2569_s8, 4  ;;  %v1095_v53 = vld [vmem:[#allocation11 + $0x10] sm:$0xff]  ;;  %v1094_v54 = vld [vmem:[#allocation11 + $0x8] sm:$0xff] }
  0x91   : > { %s2668_s7 = scalar_lea.vmem [#allocation23], %s1574_s0  ;;  %v1096_v52 = vld [vmem:[#allocation11 + $0x18] sm:$0xff]  ;;  %s2286_s17 = smov 16   ;;  %v1093_v56 = vld [vmem:[#allocation11] sm:$0xff]  ;;  %vm1214_vm7 = vcmask 523264  }
  0x92   : > { %v867_v25 = vcvt.s32.f32 %v866_v23  ;;  %v1764_v60 = vld [vmem:[#allocation13] ss:$0 sm:$0xff]  ;;  %p859_p1 = scmp.lt.s32.totalorder %s2421_s27, 1  ;;  %s2856_s18 = sld [smem:[#allocation50_spill]] }
  0x93   : > { %v872_v0 = vld [vmem:[%s2853_s25 + $0x18] sm:$0xff]  ;;  %v871_v1 = vld [vmem:[%s2853_s25 + $0x10] sm:$0xff]  ;;  %v870_v2 = vld [vmem:[%s2853_s25 + $0x8] sm:$0xff]  ;;  %s2857_s29 = sld [smem:[#allocation51_spill]]  ;;  %s1590_s30 = sshll.u32 %s2421_s27, 3 }
  0x94   : > { %893 = vmatpush.msra.mxu1 %v872_v0  ;;  %v869_v3 = vld [vmem:[%s2853_s25] sm:$0xff]  ;;  %v932_v18 = vld [vmem:[%s2854_s12 + $0x18] sm:$0xff]  ;;  %v931_v19 = vld [vmem:[%s2854_s12 + $0x10] sm:$0xff]  ;;  %v868_v26 = vmul.f32 -1e+30, %v867_v25  ;;  %s860_s28 = scalar_select %p859_p1, %s2421_s27, 1 }
  0x95   : > { %949 = vmatpush.msra.mxu2 %v932_v18  ;;  %v930_v20 = vld [vmem:[%s2854_s12 + $0x8] sm:$0xff]  ;;  %v929_v21 = vld [vmem:[%s2854_s12] sm:$0xff]  ;;  %s1304_s6 = sshll.u32 %s2668_s7, 4  ;;  %s1305_s6 = int_to_ptr.vmem [resolvable:$true] %s1304_s6 }
  0x96   : > { %894 = vmatpush.msra.mxu1 %v871_v1  ;;  %s1575_s15 = sshll.u32 %s860_s28, 3  ;;  %v2287_v1 = vmov 32.0   ;;  %v1170_v18 = vld [vmem:[#allocation17] sm:$0xff]  ;;  %s2858_s28 = sld [smem:[#allocation55_spill]] }
  0x97   : > { %950 = vmatpush.msra.mxu2 %v931_v19 }
  0x98   : > { %895 = vmatpush.msra.mxu1 %v870_v2  ;;  %v1209_v19 = vld [vmem:[%s2856_s18 + $0x38] sm:$0xff]  ;;  %v1207_v23 = vld [vmem:[%s2856_s18 + $0x28] sm:$0xff]  ;;  %v1206_v25 = vld [vmem:[%s2856_s18 + $0x20] sm:$0xff] }
  0x99   : > { %951 = vmatpush.msra.mxu2 %v930_v20  ;;  %v1208_v20 = vld [vmem:[%s2856_s18 + $0x30] sm:$0xff] }
  0x9a   : > { %896 = vmatpush.msra.mxu1 %v869_v3  ;;  %v2288_v3 = vmov 0  }
  0x9b   : > { %1576 = vmatmul.msk.f32.vlgmr.msra.gmra.mxu1 %vm877_vm0, %v2623_v4  ;;  %952 = vmatpush.msra.mxu2 %v929_v21 }
  0x9c   : > { %921 = vmatpush.msrb.mxu1 %v904_v5  ;;  %1578 = vmatmul.msk.f32.vlgmr.msra.gmra.mxu2 %vm877_vm0, %v2623_v4  ;;  %s2165_s19 = scalar_lea.hbm %s2858_s28, 32 }
  0x9d   : > { %1116 = vmatpush.msrb.mxu2 %v1096_v52  ;;  %1760 = vset.pattern.permute.xlu0 %v2288_v3 }
  0x9e   : > { %922 = vmatpush.msrb.mxu1 %v903_v6 }
  0x9f   : > { %1117 = vmatpush.msrb.mxu2 %v1095_v53 }
  0xa0   : > { %923 = vmatpush.msrb.mxu1 %v902_v7 }
  0xa1   : > { %1118 = vmatpush.msrb.mxu2 %v1094_v54 }
  0xa2   : > { %924 = vmatpush.msrb.mxu1 %v901_v8 }
  0xa3   : > { %1577 = vmatmul.msk.f32.vlgmr.msrb.gmra.mxu1 %vm877_vm0, %v2623_v4  ;;  %1119 = vmatpush.msrb.mxu2 %v1093_v56 }
 0x118   : > { %v898_v9 = vpop.f32.mrf.mxu1 }
 0x119   : > { %v899_v12 = vadd.f32 %v1761_v10, %v898_v9 }
 0x11b   : > { %v957_v15 = vmul.f32 0.25, %v899_v12 }
 0x11f   : > { %v954_v34 = vpop.f32.mrf.mxu2 }
 0x120   : > { %v926_v13 = vpop.f32.mrf.mxu1  ;;  %v955_v36 = vadd.f32 %v1763_v32, %v954_v34 }
 0x121   : > { %v927_v14 = vadd.f32 %v1762_v11, %v926_v13 }
 0x122   : > { %1060 = vmatpush.msra.mxu0 %v955_v36 }
 0x123   : > { %962 = vrot.lane.b32.xlu0 %v927_v14, %s2285_s2  ;;  %1579 = vmatpush.xpose.msk.msra.mxu3 %vm968_vm1, %v927_v14 }
 0x124   : > { %1226 = vmatpush.msrb.mxu0 %v1209_v19 }
 0x126   : > { %1580 = vmatmul.msk.f32.vlgmr.msra.gmra.mxu3 %vm968_vm1, %v957_v15  ;;  %1227 = vmatpush.msrb.mxu0 %v1208_v20 }
 0x128   : > { %1228 = vmatpush.msrb.mxu0 %v1207_v23 }
 0x12a   : > { %1229 = vmatpush.msrb.mxu0 %v1206_v25 }
 0x12b   : > { %959 = vrot.lane.b32.xlu0 %v957_v15, %s2285_s2  ;;  %v1173_v15 = vld [vmem:[#allocation17 + $0x18] sm:$0xff] }
 0x195   : > { %v963_v16 = vpop.permute.xlu0 %962 }
 0x196   : > { %1581 = vmatpush.xpose.msk.msrb.mxu3 %vm968_vm1, %v963_v16  ;;  %v1172_v16 = vld [vmem:[#allocation17 + $0x10] sm:$0xff] }
 0x19a   : > { %1193 = vmatpush.msra.mxu3 %v1173_v15 }
 0x19c   : > { %1194 = vmatpush.msra.mxu3 %v1172_v16 }
 0x19d   : > { %v960_v17 = vpop.permute.xlu0 %959 }
 0x19e   : > { %1582 = vmatmul.msk.f32.vlgmr.msrb.gmra.mxu3 %vm968_vm1, %v960_v17  ;;  %v1171_v17 = vld [vmem:[#allocation17 + $0x8] sm:$0xff] }
 0x19f   : > { %1195 = vmatpush.msra.mxu3 %v1171_v17 }
 0x1a1   : > { %1196 = vmatpush.msra.mxu3 %v1170_v18 }
 0x1a9   : > { %v990_v24 = vpop.f32.mrf.mxu3 }
 0x1aa   : > { %v991_v30 = vadd.f32 %v990_v24, %v868_v26 }
 0x1ac   : > { %v1018_v31 = vsel %vm1017_vm2, %v991_v30, -inf }
 0x221   : > { %v1014_v27 = vpop.f32.mrf.mxu3 }
 0x222   : > { %v1015_v28 = vadd.f32 %v1014_v27, %v868_v26  ;;  %v1205_v26 = vld [vmem:[%s2856_s18 + $0x18] sm:$0xff] }
 0x223   : > { %1230 = vmatpush.msrb.mxu0 %v1205_v26 }
 0x224   : > { %v1021_v29 = vsel %vm1017_vm2, %v1015_v28, -inf }
 0x225   : > { %1022 = vmax.xlane.f32.xlu1 %v1021_v29 }
 0x22d   : > { %1019 = vmax.xlane.f32.xlu1 %v1018_v31 }
 0x298   : > { %v1023_v33 = vpop.xlane.xlu1 %1022 }
 0x299   : > { %v1025_v35 = vsub.f32 %v1015_v28, %v1023_v33  ;;  %v1765_v33 = vld [vmem:[#allocation14] ss:$0 sm:$0xff] }
 0x29b   : > { %v1028_v37 = vmul.f32 1.442695, %v1025_v35  ;;  %v1766_v35 = vld [vmem:[#allocation16] ss:$0 sm:$0xff] }
 0x29d   : > { %1771 = vpow2.f32 %v1028_v37 }
 0x2a0   : > { %v1020_v38 = vpop.xlane.xlu1 %1019 }
 0x2a1   : > { %v1024_v39 = vsub.f32 %v991_v30, %v1020_v38 }
 0x2a3   : > { %v1772_v40 = vpop.eup %1771  ;;  %v1026_v41 = vmul.f32 1.442695, %v1024_v39 }
 0x2a4   : > { %v1033_v42 = vsel %vm1017_vm2, %v1772_v40, 0.0 }
 0x2a5   : > { %1773 = vpow2.f32 %v1026_v41  ;;  %1034 = vadd.xlane.f32.xlu2 %v1033_v42  ;;  %v1204_v41 = vld [vmem:[%s2856_s18 + $0x10] sm:$0xff]  ;;  %v1203_v42 = vld [vmem:[%s2856_s18 + $0x8] sm:$0xff] }
 0x2a6   : > { %1231 = vmatpush.msrb.mxu0 %v1204_v41 }
 0x2a8   : > { %1232 = vmatpush.msrb.mxu0 %v1203_v42 }
 0x2ab   : > { %v1774_v43 = vpop.eup %1773 }
 0x2ac   : > { %v1030_v44 = vsel %vm1017_vm2, %v1774_v43, 0.0 }
 0x2ad   : > { %1031 = vadd.xlane.f32.xlu0 %v1030_v44  ;;  %v1767_v44 = vld [vmem:[#allocation19] ss:$0 sm:$0xff] }
 0x2bd   : > { %965 = vrot.lane.b32.xlu2 %v955_v36, %s2285_s2  ;;  %s2855_s2 = sld [smem:[#allocation37_spill]] }
 0x2c3   : > { %s862_s16 = scalar_lea.vmem %s2855_s2, %s1575_s15  ;;  %s1303_s15 = scalar_lea.hbm %s2858_s28, %s1590_s30 }
 0x2c4   : > { %v864_v2 = vld [vmem:[%s862_s16] sm:$0xff]  ;;  %s1306_s26 = sshll.u32 %s1303_s15, 4  ;;  %s1279_s2 = scalar_lea.sflag [#allocation24], %s2569_s8  ;;  %s1307_s26 = int_to_ptr.hbm [resolvable:$true] %s1306_s26 }
 0x2c5   : > { %1166 = vperm.xlu0 %1760, %v864_v2   ;;  %s2159_s16 = sshra.s32 %s1307_s26, 4  ;;  %s2160_s16 = int_to_ptr.hbm [resolvable:$true] %s2159_s16 }
 0x2c6   : > { %s2161_s3 = scalar_lea.hbm %s2160_s16, 16  ;;  %p2166_p9 = scmp.lt.s32.totalorder %s2160_s16, %s2858_s28 }
 0x2c7   : > { %p2162_p3 = scmp.ne.s32.totalorder %s2160_s16, %s2161_s3  ;;  %p2167_p4 = scmp.lt.s32.totalorder %s2165_s19, %s2161_s3 }
 0x2c9   : > { %p2163_p12 = pnand %p2162_p3, %p2516_p5  ;;  %p2168_p8 = por %p2167_p4, %p2166_p9 }
 0x2cb   : > { %p2164_p7 = pneg %p2163_p12 }
 0x2cd   : > { %p2169_p10 = pnand %p2168_p8, %p2164_p7 }
 0x318   : > { %v1035_v45 = vpop.xlane.xlu2 %1034 }
 0x319   : > { %1775 = vrcp.f32 %v1035_v45 }
 0x31f   : > { %v1776_v46 = vpop.eup %1775 }
 0x320   : > { %v1039_v47 = vmul.f32 %v1776_v46, %v1772_v40  ;;  %v966_v48 = vpop.permute.xlu2 %965  ;;  %v1032_v49 = vpop.xlane.xlu0 %1031 }
 0x321   : > { %1777 = vrcp.f32 %v1032_v49  ;;  %1083 = vmatpush.msra.mxu1 %v966_v48  ;;  %v1768_v48 = vld [vmem:[%s2857_s29] ss:$0 sm:$0xff] }
 0x322   : > { %1041 = vst.msk [vmem:[%s2668_s7 + $0x8] sm:$0xff] %vm1017_vm2, %v1039_v47  ;;  %1584 = vmatmul.msk.f32.vlgmr.msra.gmra.mxu1 %vm1017_vm2, %v1039_v47  ;;  %1779 = vrcp.f32 %v2287_v1 }
 0x327   : > { %v1778_v50 = vpop.eup %1777 }
 0x328   : > { %v1038_v51 = vmul.f32 %v1778_v50, %v1774_v43  ;;  %v1780_v5 = vpop.eup %1779  ;;  %v1202_v43 = vld [vmem:[%s2856_s18] sm:$0xff] }
 0x329   : > { %v1131_v6 = vmul.f32 32.0, %v1780_v5  ;;  %vm1135_vm3 = vweird.f32 %v1780_v5  ;;  %1233 = vmatpush.msrb.mxu0 %v1202_v43 }
 0x32a   : > { %1040 = vst.msk [vmem:[%s2668_s7] sm:$0xff] %vm1017_vm2, %v1038_v51  ;;  %1583 = vmatmul.msk.f32.vlgmr.msra.gmra.mxu0 %vm1017_vm2, %v1038_v51 }
 0x32b   : > { %v1132_v7 = vsub.f32 1.0, %v1131_v6 }
 0x337   : > { %v2705_v38 = vpop.permute.xlu0 %1166 }
 0x39f   : > { %v1085_v55 = vpop.f32.mrf.mxu1 }
 0x3a0   : > { %1089 = vrot.lane.b32.xlu1 %v1085_v55, %s2286_s17 }
 0x3a7   : > { %v1062_v57 = vpop.f32.mrf.mxu0 }
 0x412   : > { %v1090_v58 = vpop.permute.xlu1 %1089 }
 0x413   : > { %v1092_v59 = vsel %vm968_vm1, %v1062_v57, %v1090_v58 }
 0x414   : > { %1585 = vmatmul.msk.f32.vlgmr.msrb.gmra.mxu2 %vm877_vm0, %v1092_v59 }
 0x497   : > { %v1121_v61 = vpop.f32.mrf.mxu2 }
 0x498   : > { %v1122_v62 = vadd.f32 %v1764_v60, %v1121_v61 }
 0x49a   : > { %v1124_v63 = vadd.f32 %v1122_v62, %v2623_v4  ;;  %v1133_v4 = vmul.f32 %v1780_v5, %v1132_v7 }
 0x49c   : > { %v1127_v0 = vsel %vm877_vm0, %v1124_v63, 0.0  ;;  %v1134_v8 = vadd.f32 %v1780_v5, %v1133_v4 }
 0x49d   : > { %1128 = vadd.xlane.f32.xlu2 %v1127_v0 }
 0x49e   : > { %v2685_v9 = vsel %vm1135_vm3, %v1780_v5, %v1134_v8 }
 0x510   : > { %v1129_v10 = vpop.xlane.xlu2 %1128 }
 0x511   : > { %v1137_v11 = vmul.f32 %v2685_v9, %v1129_v10 }
 0x513   : > { %v1138_v12 = vsub.f32 %v1124_v63, %v1137_v11 }
 0x515   : > { %v1139_v13 = vmul.f32 %v1138_v12, %v1138_v12 }
 0x517   : > { %v1140_v14 = vsel %vm877_vm0, %v1139_v13, 0.0 }
 0x518   : > { %1141 = vadd.xlane.f32.xlu1 %v1140_v14 }
 0x58b   : > { %v1142_v21 = vpop.xlane.xlu1 %1141 }
 0x58c   : > { %v1143_v22 = vmul.f32 %v1142_v21, %v2685_v9 }
 0x58e   : > { %v1144_v24 = vadd.f32 1e-05, %v1143_v22 }
 0x590   : > { %1781 = vrsqrt.f32 %v1144_v24  ;;  %vm1151_vm5 = vweird.f32 %v1144_v24 }
 0x596   : > { %v1782_v27 = vpop.eup %1781 }
 0x597   : > { %v1146_v28 = vmul.f32 %v1782_v27, %v1144_v24  ;;  %vm1152_vm4 = vweird.f32 %v1782_v27 }
 0x598   : > { %vm1153_vm6 = vmor %vm1151_vm5, %vm1152_vm4 }
 0x599   : > { %v1147_v29 = vmul.f32 %v1782_v27, %v1146_v28 }
 0x59b   : > { %v1148_v30 = vmul.f32 0.5, %v1147_v29 }
 0x59d   : > { %v1149_v31 = vsub.f32 1.5, %v1148_v30 }
 0x59f   : > { %v1150_v32 = vmul.f32 %v1782_v27, %v1149_v31 }
 0x5a1   : > { %v1154_v34 = vsel %vm1153_vm6, %v1782_v27, %v1150_v32 }
 0x5a2   : > { %v1155_v36 = vmul.f32 %v1154_v34, %v1138_v12 }
 0x5a4   : > { %v1159_v37 = vmul.f32 %v1765_v33, %v1155_v36 }
 0x5a6   : > { %v1163_v39 = vadd.f32 %v1766_v35, %v1159_v37 }
 0x5a8   : > { %v1169_v40 = vmul.f32 %v2705_v38, %v1163_v39 }
 0x5aa   : > { %1586 = vmatmul.msk.f32.vlgmr.msra.gmra.mxu3 %vm877_vm0, %v1169_v40 }
 0x62d   : > { %v1198_v45 = vpop.f32.mrf.mxu3 }
 0x62e   : > { %v1199_v46 = vadd.f32 %v1767_v44, %v1198_v45 }
 0x630   : > { %v1201_v47 = vmax.f32 %v1199_v46, 0.0 }
 0x632   : > { %1587 = vmatmul.msk.f32.vlgmr.msrb.gmra.mxu0 %vm1214_vm7, %v1201_v47 }
 0x6af   : > { %v1235_v49 = vpop.f32.mrf.mxu0 }
 0x6b0   : > { %v1236_v50 = vadd.f32 %v1768_v48, %v1235_v49 }
 0x6b2   : > { %v1238_v51 = vadd.f32 %v1236_v50, %v1169_v40 }
 0x6b4   : > { %v1241_v52 = vsel %vm877_vm0, %v1238_v51, 0.0 }
 0x6b5   : > { %1242 = vadd.xlane.f32.xlu2 %v1241_v52 }
 0x728   : > { %v1243_v53 = vpop.xlane.xlu2 %1242 }
 0x729   : > { %v1244_v54 = vmul.f32 %v1243_v53, %v2685_v9 }
 0x72b   : > { %v1245_v55 = vsub.f32 %v1238_v51, %v1244_v54 }
 0x72d   : > { %v1246_v56 = vmul.f32 %v1245_v55, %v1245_v55 }
 0x72f   : > { %v1247_v57 = vsel %vm877_vm0, %v1246_v56, 0.0 }
 0x730   : > { %1248 = vadd.xlane.f32.xlu2 %v1247_v57 }
 0x731   : > { %2172 = shalt.err (!%p2169_p10)
}
 0x732   : > { %s2289_s7 = smov 128   ;;  %s2290_s0 = smov 256   ;;  %v1769_v3 = vld [vmem:[#allocation20] ss:$0 sm:$0xff] }
 0x733   : > { %s2291_s17 = smov 8   ;;  %s2860_s16 = sld [smem:[#allocation54_spill]] }
 0x734   : > { %1639 = dma.vmem_to_hbm [thread:$0]  (%p2516_p5), %s1305_s6, 256, %s1307_s26, %s1279_s2, %s2289_s7, %s2290_s0, %s2291_s17  }
 0x735   : > { %s2859_s26 = sld [smem:[#allocation53_spill]]  ;;  %s2861_s13 = sshll.u32 %s2569_s8, 3 }
 0x736   : > { %s851_s11 = scalar_lea.vmem [#allocation22], %s2861_s13  ;;  %s1274_s7 = scalar_lea.sflag [#allocation4], %s2569_s8 }
 0x737   : > { %s1291_s19 = sshll.u32 %s851_s11, 4  ;;  %s1292_s19 = int_to_ptr.vmem [resolvable:$true] %s1291_s19 }
 0x739   : > { %s1289_s3 = scalar_lea.hbm %s2860_s16, %s1590_s30  ;;  %s2193_s10 = scalar_lea.hbm %s2860_s16, 16 }
 0x73a   : > { %s1293_s29 = sshll.u32 %s1289_s3, 4  ;;  %s1294_s29 = int_to_ptr.hbm [resolvable:$true] %s1293_s29 }
 0x73b   : > { %v1770_v6 = vld [vmem:[%s2859_s26] ss:$0 sm:$0xff]  ;;  %s2187_s0 = sshra.s32 %s1294_s29, 4  ;;  %s2188_s0 = int_to_ptr.hbm [resolvable:$true] %s2187_s0 }
 0x73c   : > { %s2189_s27 = scalar_lea.hbm %s2188_s0, 8  ;;  %p2194_p2 = scmp.lt.s32.totalorder %s2188_s0, %s2860_s16 }
 0x73d   : > { %p2190_p13 = scmp.ne.s32.totalorder %s2188_s0, %s2189_s27  ;;  %p2195_p1 = scmp.lt.s32.totalorder %s2193_s10, %s2189_s27 }
 0x73f   : > { %p2191_p11 = pnand %p2190_p13, %p2516_p5  ;;  %p2196_p3 = por %p2195_p1, %p2194_p2 }
 0x741   : > { %p2192_p0 = pneg %p2191_p11 }
 0x743   : > { %p2197_p12 = pnand %p2196_p3, %p2192_p0 }
 0x7a3   : > { %v1249_v58 = vpop.xlane.xlu2 %1248 }
 0x7a4   : > { %v1250_v59 = vmul.f32 %v1249_v58, %v2685_v9 }
 0x7a6   : > { %v1251_v60 = vadd.f32 1e-05, %v1250_v59 }
 0x7a8   : > { %1783 = vrsqrt.f32 %v1251_v60  ;;  %vm1258_vm9 = vweird.f32 %v1251_v60 }
 0x7ae   : > { %v1784_v61 = vpop.eup %1783 }
 0x7af   : > { %v1253_v62 = vmul.f32 %v1784_v61, %v1251_v60  ;;  %vm1259_vm8 = vweird.f32 %v1784_v61 }
 0x7b0   : > { %vm1260_vm10 = vmor %vm1258_vm9, %vm1259_vm8 }
 0x7b1   : > { %v1254_v63 = vmul.f32 %v1784_v61, %v1253_v62 }
 0x7b3   : > { %v1255_v0 = vmul.f32 0.5, %v1254_v63 }
 0x7b5   : > { %v1256_v1 = vsub.f32 1.5, %v1255_v0 }
 0x7b7   : > { %v1257_v2 = vmul.f32 %v1784_v61, %v1256_v1 }
 0x7b9   : > { %v1261_v5 = vsel %vm1260_vm10, %v1784_v61, %v1257_v2 }
 0x7ba   : > { %v1262_v7 = vmul.f32 %v1261_v5, %v1245_v55 }
 0x7bc   : > { %v1266_v4 = vmul.f32 %v1769_v3, %v1262_v7 }
 0x7be   : > { %v1270_v8 = vadd.f32 %v1770_v6, %v1266_v4 }
 0x7c0   : > { %v1271_v9 = vmul.f32 %v1270_v8, %v2705_v38 }
 0x7c2   : > { %1272 = vst.msk [vmem:[%s851_s11] sm:$0xff] %vm877_vm0, %v1271_v9 }
 0x7c3   : > { %2200 = shalt.err (!%p2197_p12)
}
 0x7c4   : > { %1638 = dma.vmem_to_hbm [thread:$0]  (%p2516_p5), %s1292_s19, 128, %s1294_s29, %s1274_s7  }
 0x7c5 PF: > { %s1321_s8 = sand.u32 1, %s2259_s1   ;;  %p2862_p7 = scmp.ge.s32.totalorder %s2271_s24, 2 }
 0x7c6   : > { %s1322_s6 = scalar_lea.sflag [#allocation4], %s1321_s8 }
 0x7c7   : > { %p1681_p9 = pnand %p2862_p7, %p2520_p6 }
 0x7c9   : > { %p1682_p4 = pneg %p1681_p9 }
 0x7cb   : > { %2250 = dma.done.wait (%p1682_p4), %s1322_s6, 128  }
 0x7cc   : > { %2252 = vsyncadd (%p1682_p4), %s1322_s6, 4294967168  ;;  %s1332_s2 = scalar_lea.sflag [#allocation24], %s1321_s8 }
 0x7cd   : > { %2254 = dma.done.wait (%p1682_p4), %s1332_s2, 256  }
 0x7ce   : > { %2256 = vsyncadd (%p1682_p4), %s1332_s2, 4294967040  ;;  %s2863_s21 = sld [smem:[#allocation35_spill]]  ;;  %p45_p5 = scmp.ge.s32.totalorder %s2488_s4, 4  }
 0x7cf   : > { %s2864_s1 = smov %s2263_s22  ;;  %s2865_s22 = smov %s2267_s23 }
 0x7d0   : > { %s2867_s24 = smov %s2488_s4  ;;  %47 = sbr.rel (!%p45_p5) target bundleno = 35 (0x23), region = 214 }
 0x7d4   : > { %s2866_s23 = smov %s2863_s21 }
 0x7d5   :  { %1338 = vsyncpa [#allocation3], 1 }
 0x7d6   :  { %1340 = vsyncpa [#allocation3 + $0x1], 1 }
 0x7d7   :  { %1341 = vsyncpa [#allocation6], 1 }
 0x7d8   :  { %1343 = vsyncpa [#allocation6 + $0x1], 1 }
 0x7d9   :  { %1344 = vsyncpa [#allocation9], 1 }
 0x7da   :  { %1345 = vsyncpa [#allocation12], 1 }
 0x7db   :  { %1346 = vsyncpa [#allocation15], 1 }
 0x7dc   :  { %1347 = vsyncpa [#allocation18], 1 }
 0x7dd   :  { %1348 = vsyncpa [#allocation21], 1 }
 0x7de   :  { %1349 = vsyncpa [#allocation4], 1 }
 0x7df   :  { %1351 = vsyncpa [#allocation4 + $0x1], 1 }
 0x7e0   :  { %1352 = vsyncpa [#allocation24], 1 }
 0x7e1   :  { %1354 = vsyncpa [#allocation24 + $0x1], 1 }

</bundles_post_ra>
